<compile_context>
chip_gen: v7x
topology: tpu7x:2x2x1
jax: 0.10.0
libtpu: 0.0.40
codegen_flags: <defaults>
</compile_context>

<pallas_src>
import jax
import jax.numpy as jnp
from jax.experimental import pallas as pl
from jax.experimental.pallas import tpu as pltpu


def _round_up(a: int, b: int) -> int:
    return (a + b - 1) // b * b


def _vmem_capacity_bytes() -> int:
    try:
        return int(pltpu.get_tpu_info().vmem_capacity_bytes)
    except Exception:
        return 64 * 1024 * 1024  # conservative (v7x-sized) fallback


def _sublane(itemsize: int) -> int:
    if itemsize >= 4:
        return 8
    if itemsize == 2:
        return 16
    return 32


def _choose_tiles(M: int, N: int, Kp: int, itemsize: int, vmem_cap: int):
    """Kp is already a multiple of 128 and tk always divides it, so there is
    never OOB garbage along the reduction dim.  M / N may be ragged: edge
    blocks are partial and Pallas masks out-of-bounds output writes."""
    sub = _sublane(itemsize)
    big_vmem = vmem_cap >= 100 * 1024 * 1024     # v5e / v6e: 128 MiB physical
    cap_m = 1024 if big_vmem else 512
    cap_n = 1024 if big_vmem else 512
    cap_k = 2048 if big_vmem else 1024           # v7x: 64 MiB VMEM per TC

    tm = min(cap_m, _round_up(M, sub))
    tn = min(cap_n, _round_up(N, 128))

    if Kp <= cap_k:
        tk = Kp
    else:
        tk = 128
        t = (min(cap_k, Kp) // 128) * 128
        while t >= 128:                          # largest 128-multiple divisor
            if Kp % t == 0:
                tk = t
                break
            t -= 128

    # Guarantee >= 2 parallel blocks when possible so both v7x TensorCores get
    # work; on 1-TC chips this only adds ~0.35us of grid overhead.
    if pl.cdiv(M, tm) * pl.cdiv(N, tn) == 1:
        if tn >= 256:
            tn = _round_up(tn // 2, 128)
        elif tm >= 2 * sub:
            tm = _round_up(pl.cdiv(tm, 2), sub)

    return tm, tn, tk


def _mm_bias_single_k_kernel(x_ref, w_ref, b_ref, o_ref):
    """K fits in one tile: one MXU call, bias + output cast fused."""
    acc = jnp.dot(x_ref[...], w_ref[...], preferred_element_type=jnp.float32)
    o_ref[...] = (acc + b_ref[...].astype(jnp.float32)).astype(o_ref.dtype)


def _mm_bias_multi_k_kernel(x_ref, w_ref, b_ref, o_ref, acc_ref):
    """Tiled over (M, N, K): accumulate in a resident f32 VMEM scratch, fuse
    the bias at k == 0, cast + store the output once on the last K step."""
    k = pl.program_id(2)
    partial = jnp.dot(x_ref[...], w_ref[...], preferred_element_type=jnp.float32)

    @pl.when(k == 0)
    def _():
        acc_ref[...] = partial + b_ref[...].astype(jnp.float32)

    @pl.when(k > 0)
    def _():
        acc_ref[...] += partial

    @pl.when(k == pl.num_programs(2) - 1)
    def _():
        o_ref[...] = acc_ref[...].astype(o_ref.dtype)


def prepare_params(weight, bias, dtype=None):
    """Call ONCE at parameter init (hoisted out of the per-call forward):
    optionally cast, and zero-pad the weight's reduction (K) dim to a multiple
    of 128 so the forward never re-pads / re-casts the largest operand."""
    if dtype is not None:
        weight = weight.astype(dtype)
        bias = bias.astype(dtype)
    K, N = weight.shape
    Kp = _round_up(K, 128)
    if Kp != K:
        weight = jnp.pad(weight, ((0, Kp - K), (0, 0)))
    return weight, bias.reshape(1, N)


@jax.jit
def sparse_input_linear(x, weight_p, bias_row):
    """Pallas TPU implementation of SparseInputLinear.forward: x @ W + b.

    `weight_p` / `bias_row` come from `prepare_params` (K padded to a 128
    multiple, bias as a (1, N) row).  Compute runs in the operands' native
    dtype on the MXU with f32 accumulation; output is emitted in x's dtype.
    """
    Kp, N = weight_p.shape
    out_dtype = x.dtype
    lead = x.shape[:-1]
    K = x.shape[-1]

    x2 = x.reshape(-1, K).astype(weight_p.dtype)   # no-op when dtypes match
    if Kp != K:
        # Only the reduction dim genuinely needs zeros (garbage there would
        # corrupt every output); M and N are left ragged.
        x2 = jnp.pad(x2, ((0, 0), (0, Kp - K)))
    M = x2.shape[0]

    itemsize = x2.dtype.itemsize
    out_itemsize = jnp.dtype(out_dtype).itemsize
    vmem_cap = _vmem_capacity_bytes()
    tm, tn, tk = _choose_tiles(M, N, Kp, itemsize, vmem_cap)
    gm, gn, gk = pl.cdiv(M, tm), pl.cdiv(N, tn), Kp // tk

    cost = pl.CostEstimate(
        flops=2 * M * N * Kp,
        transcendentals=0,
        bytes_accessed=(
            gn * M * Kp * itemsize        # x is re-read once per N tile
            + gm * Kp * N * itemsize      # W is re-read once per M tile
            + gm * N * itemsize           # bias
            + M * N * out_itemsize        # output written once
        ),
    )
    if vmem_cap >= 100 * 1024 * 1024:
        vmem_limit = 96 * 1024 * 1024     # v5e / v6e (128 MiB physical)
    elif vmem_cap >= 60 * 1024 * 1024:
        vmem_limit = 48 * 1024 * 1024     # v7x (64 MiB per TensorCore)
    else:
        vmem_limit = 32 * 1024 * 1024

    out_shape = jax.ShapeDtypeStruct((M, N), out_dtype)

    if gk == 1:
        out = pl.pallas_call(
            _mm_bias_single_k_kernel,
            out_shape=out_shape,
            grid_spec=pltpu.PrefetchScalarGridSpec(
                num_scalar_prefetch=0,
                grid=(gm, gn),
                in_specs=[
                    pl.BlockSpec((tm, tk), lambda i, j: (i, 0)),   # x
                    pl.BlockSpec((tk, tn), lambda i, j: (0, j)),   # W
                    pl.BlockSpec((1, tn), lambda i, j: (0, j)),    # bias
                ],
                out_specs=pl.BlockSpec((tm, tn), lambda i, j: (i, j)),
            ),
            compiler_params=pltpu.CompilerParams(
                dimension_semantics=("parallel", "parallel"),
                vmem_limit_bytes=vmem_limit,
            ),
            cost_estimate=cost,
        )(x2, weight_p, bias_row)
    else:
        # K is the innermost ("arbitrary") reduction axis; the f32 scratch is
        # resident across it.  (pipeline_mode=pl.Buffered(3) on the weight
        # spec can further help v7x weight-streaming; omitted to keep the
        # kernel uniform across generations.)
        out = pl.pallas_call(
            _mm_bias_multi_k_kernel,
            out_shape=out_shape,
            grid_spec=pltpu.PrefetchScalarGridSpec(
                num_scalar_prefetch=0,
                grid=(gm, gn, gk),
                in_specs=[
                    pl.BlockSpec((tm, tk), lambda i, j, k: (i, k)),  # x
                    pl.BlockSpec((tk, tn), lambda i, j, k: (k, j)),  # W
                    pl.BlockSpec((1, tn), lambda i, j, k: (0, j)),   # bias
                ],
                out_specs=pl.BlockSpec((tm, tn), lambda i, j, k: (i, j)),
                scratch_shapes=[pltpu.VMEM((tm, tn), jnp.float32)],
            ),
            compiler_params=pltpu.CompilerParams(
                dimension_semantics=("parallel", "parallel", "arbitrary"),
                vmem_limit_bytes=vmem_limit,
            ),
            cost_estimate=cost,
        )(x2, weight_p, bias_row)

    return out.reshape(lead + (N,))


def init_params(key, inp_dim, out_dim, dtype=jnp.float32):
    """Deterministic re-implementation of SparseInputLinear.reset_parameters."""
    stdv = 1.0 / jnp.sqrt(jnp.float32(out_dim))   # weight.size(1) == out_dim
    kw, kb = jax.random.split(key)
    weight = jax.random.uniform(kw, (inp_dim, out_dim), dtype=jnp.float32,
                                minval=-stdv, maxval=stdv)
    bias = jax.random.uniform(kb, (out_dim,), dtype=jnp.float32,
                              minval=-stdv, maxval=stdv)
    return weight.astype(dtype), bias.astype(dtype)


if __name__ == "__main__":
    key = jax.random.PRNGKey(0)
    k1, k2, k3, k4, k5, k6 = jax.random.split(key, 6)

    # Case 1: small shapes consistent with the module (single-K-tile path;
    # K=32 padded to 128 once inside prepare_params).
    n_rows, inp_dim, out_dim = 8, 32, 128
    x = jax.random.normal(k1, (n_rows, inp_dim), dtype=jnp.float32)
    w, b = init_params(k2, inp_dim, out_dim)
    wp, br = prepare_params(w, b)
    y = jax.block_until_ready(sparse_input_linear(x, wp, br))
    y_ref = jnp.matmul(x, w, precision=jax.lax.Precision.HIGHEST) + b
    assert y.shape == (n_rows, out_dim) and y.dtype == x.dtype
    assert jnp.allclose(y, y_ref, atol=3e-3, rtol=3e-3)

    # Case 2: ragged M/N with K=1536 (no padding anywhere, partial edge blocks
    # in N, parallel split so the grid has >= 2 blocks).
    n_rows2, inp_dim2, out_dim2 = 136, 1536, 200
    x2 = jax.random.normal(k3, (n_rows2, inp_dim2), dtype=jnp.float32)
    w2, b2 = init_params(k4, inp_dim2, out_dim2)
    wp2, br2 = prepare_params(w2, b2)
    y2 = jax.block_until_ready(sparse_input_linear(x2, wp2, br2))
    y2_ref = jnp.matmul(x2, w2, precision=jax.lax.Precision.HIGHEST) + b2
    assert y2.shape == (n_rows2, out_dim2)
    assert jnp.allclose(y2, y2_ref, atol=3e-3, rtol=3e-3)

    # Case 3: bf16 operands (native MXU fast path, f32 accumulation, bf16
    # output) with K large enough to exercise the multi-K reduction on every
    # generation.
    n_rows3, inp_dim3, out_dim3 = 64, 4096, 384
    x3 = jax.random.normal(k5, (n_rows3, inp_dim3),
                           dtype=jnp.float32).astype(jnp.bfloat16)
    w3, b3 = init_params(k6, inp_dim3, out_dim3, dtype=jnp.bfloat16)
    wp3, br3 = prepare_params(w3, b3)
    y3 = jax.block_until_ready(sparse_input_linear(x3, wp3, br3))
    y3_ref = (jnp.matmul(x3.astype(jnp.float32), w3.astype(jnp.float32),
                         precision=jax.lax.Precision.HIGHEST)
              + b3.astype(jnp.float32))
    assert y3.shape == (n_rows3, out_dim3) and y3.dtype == jnp.bfloat16
    assert jnp.allclose(y3.astype(jnp.float32), y3_ref, atol=3e-2, rtol=3e-2)

    print("KERNEL_OK")
</pallas_src>

<mosaic_0001>
module attributes {stable_mosaic.version = 11 : i64} {
  func.func @_mm_bias_single_k_kernel(%arg0: i32, %arg1: i32, %arg2: memref<8x128xf32, #tpu.memory_space<vmem>>, %arg3: memref<128x128xf32, #tpu.memory_space<vmem>>, %arg4: memref<1x128xf32, #tpu.memory_space<vmem>>, %arg5: memref<8x128xf32, #tpu.memory_space<vmem>>) attributes {dimension_semantics = [#tpu.dimension_semantics<parallel>, #tpu.dimension_semantics<parallel>], iteration_bounds = array<i64: 1, 1>, scalar_prefetch = 0 : i64, scratch_operands = 0 : i64, tpu.core_type = #tpu.core_type<tc>, window_params = [{transform_indices = @transform_0, window_bounds = array<i64: 8, 128>}, {transform_indices = @transform_1, window_bounds = array<i64: 128, 128>}, {transform_indices = @transform_2, window_bounds = array<i64: 1, 128>}, {transform_indices = @transform_3, window_bounds = array<i64: 8, 128>}]} {
    %c0 = arith.constant 0 : index
    %c0_0 = arith.constant 0 : index
    %0 = vector.load %arg2[%c0, %c0_0] : memref<8x128xf32, #tpu.memory_space<vmem>>, vector<8x128xf32>
    %c0_1 = arith.constant 0 : index
    %c0_2 = arith.constant 0 : index
    %1 = vector.load %arg3[%c0_1, %c0_2] : memref<128x128xf32, #tpu.memory_space<vmem>>, vector<128x128xf32>
    %cst = arith.constant dense<0.000000e+00> : vector<8x128xf32>
    %2 = tpu.matmul %0, %1, %cst {dimension_numbers = #tpu.dot_dimension_numbers<[1], [0], [0], [1], [0, 0, 1, 1], [], []>} : vector<8x128xf32>, vector<128x128xf32>, vector<8x128xf32> -> vector<8x128xf32>
    %c0_3 = arith.constant 0 : index
    %c0_4 = arith.constant 0 : index
    %3 = vector.load %arg4[%c0_3, %c0_4] : memref<1x128xf32, #tpu.memory_space<vmem>>, vector<1x128xf32>
    %4 = vector.broadcast %3 : vector<1x128xf32> to vector<8x128xf32>
    %5 = arith.addf %2, %4 : vector<8x128xf32>
    %c0_5 = arith.constant 0 : index
    %c0_6 = arith.constant 0 : index
    %6 = vector.load %arg5[%c0_5, %c0_6] : memref<8x128xf32, #tpu.memory_space<vmem>>, vector<8x128xf32>
    tpu.vector_store %arg5[%c0_5, %c0_6], %5 {strides = array<i32>} : memref<8x128xf32, #tpu.memory_space<vmem>>, vector<8x128xf32>,
    return
  }
  func.func @transform_0(%arg0: i32, %arg1: i32) -> (i32, i32) {
    %c0_i32 = arith.constant 0 : i32
    %c0_i32_0 = arith.constant 0 : i32
    return %arg0, %c0_i32 : i32, i32
  }
  func.func @transform_1(%arg0: i32, %arg1: i32) -> (i32, i32) {
    %c0_i32 = arith.constant 0 : i32
    %c0_i32_0 = arith.constant 0 : i32
    return %c0_i32, %arg1 : i32, i32
  }
  func.func @transform_2(%arg0: i32, %arg1: i32) -> (i32, i32) {
    %c0_i32 = arith.constant 0 : i32
    %c0_i32_0 = arith.constant 0 : i32
    return %c0_i32, %arg1 : i32, i32
  }
  func.func @transform_3(%arg0: i32, %arg1: i32) -> (i32, i32) {
    %c0_i32 = arith.constant 0 : i32
    return %arg0, %arg1 : i32, i32
  }
}

</mosaic_0001>

<bundles_post_ra>
// kernel: sparse_input_linear.1
= control target key start
LH: loop header
LB: loop body
LE: loop exit
PB: predicated region body
PF: predicated region fallthrough
CT: control target
= control target key end

     0   :  { %8 = vsyncpa [#allocation3], 0  ;;  %s328_s0 = inlined_call_operand.vmem [shape: f32[8,128], index: 0, kind: input, shape index: {}]   ;;  %s329_s1 = inlined_call_operand.hbm [shape: f32[128,128], index: 1, kind: input, shape index: {}]   ;;  %s330_s2 = inlined_call_operand.vmem [shape: f32[1,128], index: 2, kind: input, shape index: {}]   ;;  %s331_s3 = inlined_call_operand.hbm [shape: f32[8,128], index: 3, kind: output, shape index: {}]  }
   0x1   :  { %9 = vsyncpa [#allocation4], 0  ;;  %s271_s12 = smov [#allocation2]   ;;  %s223_s16 = scalar_lea.hbm %s329_s1, 2048 }
   0x2   :  { %s17_s13 = sshll.u32 %s271_s12, 4  ;;  %p224_p0 = scmp.ne.s32.totalorder %s329_s1, %s223_s16  ;;  %s18_s13 = int_to_ptr.vmem [resolvable:$true] %s17_s13 }
   0x3   :  { %p227_p1 = scmp.lt.u32.totalorder %s223_s16, %s329_s1 }
   0x5   :  { %p229_p2 = pnand %p227_p1, %p224_p0 }
   0x7   :  { %232 = shalt.err (!%p229_p2)
}
   0x8   :  { %s233_s21 = scalar_lea.vmem %s18_s13, 2048  ;;  %p238_p4 = scmp.lt.s32.totalorder %s18_s13, %s18_s13 }
   0x9   :  { %p234_p3 = scmp.ne.s32.totalorder %s18_s13, %s233_s21  ;;  %p239_p5 = scmp.lt.s32.totalorder %s233_s21, %s233_s21 }
   0xb   :  { %p240_p6 = por %p239_p5, %p238_p4 }
   0xd   :  { %p241_p7 = pnand %p240_p6, %p234_p3 }
   0xf   :  { %244 = shalt.err (!%p241_p7)
}
  0x10   :  { %s272_s22 = smov 128   ;;  %s273_s23 = smov 8  }
  0x11   :  { %23 = dma.hbm_to_vmem [thread:$0]  %s329_s1, 2048, %s18_s13, [#allocation3], %s272_s22, %s272_s22, %s273_s23  }
  0x12   :  { %267 = dma.done.wait [#allocation3], 2048  }
  0x13   :  { %268 = vsyncadd [#allocation3], 4294965248  ;;  %v274_v0 = vmov 0.0|0.0   ;;  %vm275_vm0 = vmmov 0   ;;  %v276_v1 = vmov 0.0   ;;  %v30_v2 = vld [vmem:[#allocation2] sm:$0xff] }
  0x14   :  { %192 = vmatprep.subr.bf16.mxu0 %v274_v0  ;;  %189 = vmatprep.mubr.msk.f32.mxu0 %vm275_vm0, %v276_v1  ;;  %v31_v3 = vld [vmem:[#allocation2 + $0x8] sm:$0xff]  ;;  %v32_v4 = vld [vmem:[#allocation2 + $0x10] sm:$0xff]  ;;  %v33_v6 = vld [vmem:[#allocation2 + $0x18] sm:$0xff]  ;;  %s277_s29 = smov [#allocation5]  }
  0x15   :  { %v193_v5 = vpack.c.bf16 %v31_v3, %v30_v2  ;;  %v196_v7 = vpack.c.bf16 %v33_v6, %v32_v4  ;;  %v34_v8 = vld [vmem:[#allocation2 + $0x20] sm:$0xff]  ;;  %v35_v9 = vld [vmem:[#allocation2 + $0x28] sm:$0xff]  ;;  %v36_v11 = vld [vmem:[#allocation2 + $0x30] sm:$0xff]  ;;  %s130_s30 = sshll.u32 %s277_s29, 4  ;;  %s131_s30 = int_to_ptr.vmem [resolvable:$true] %s130_s30 }
  0x16   :  { %v199_v10 = vpack.c.bf16 %v35_v9, %v34_v8  ;;  %v37_v12 = vld [vmem:[#allocation2 + $0x38] sm:$0xff]  ;;  %v38_v14 = vld [vmem:[#allocation2 + $0x40] sm:$0xff]  ;;  %v39_v15 = vld [vmem:[#allocation2 + $0x48] sm:$0xff]  ;;  %s245_s4 = scalar_lea.vmem %s131_s30, 128  ;;  %p250_p9 = scmp.lt.s32.totalorder %s131_s30, %s131_s30 }
  0x17   :  { %194 = vmatpush3.bf16.msra.mxu0 %v193_v5  ;;  %v202_v13 = vpack.c.bf16 %v37_v12, %v36_v11  ;;  %v205_v16 = vpack.c.bf16 %v39_v15, %v38_v14  ;;  %v40_v17 = vld [vmem:[#allocation2 + $0x50] sm:$0xff]  ;;  %v41_v18 = vld [vmem:[#allocation2 + $0x58] sm:$0xff]  ;;  %v42_v20 = vld [vmem:[#allocation2 + $0x60] sm:$0xff]  ;;  %p246_p8 = scmp.ne.s32.totalorder %s131_s30, %s245_s4  ;;  %p251_p10 = scmp.lt.s32.totalorder %s245_s4, %s245_s4 }
  0x18   :  { %195 = vmatprep.subr.bf16.mxu0 %v274_v0  ;;  %v208_v19 = vpack.c.bf16 %v41_v18, %v40_v17  ;;  %v43_v21 = vld [vmem:[#allocation2 + $0x68] sm:$0xff]  ;;  %v44_v23 = vld [vmem:[#allocation2 + $0x70] sm:$0xff]  ;;  %v45_v24 = vld [vmem:[#allocation2 + $0x78] sm:$0xff] }
  0x19   :  { %v211_v22 = vpack.c.bf16 %v43_v21, %v42_v20  ;;  %v214_v25 = vpack.c.bf16 %v45_v24, %v44_v23  ;;  %v29_v26 = vld [vmem:[%s328_s0] sm:$0xff]  ;;  %p252_p11 = por %p251_p10, %p250_p9 }
  0x1a   :  { %v139_v27 = vld [vmem:[%s330_s2] ss:$0 sm:$0xff] }
  0x1b   :  { %197 = vmatpush3.bf16.msra.mxu0 %v196_v7  ;;  %p253_p12 = pnand %p252_p11, %p246_p8 }
  0x1c   :  { %198 = vmatprep.subr.bf16.mxu0 %v274_v0 }
  0x1f   :  { %200 = vmatpush3.bf16.msra.mxu0 %v199_v10 }
  0x20   :  { %201 = vmatprep.subr.bf16.mxu0 %v274_v0 }
  0x23   :  { %203 = vmatpush3.bf16.msra.mxu0 %v202_v13 }
  0x24   :  { %204 = vmatprep.subr.bf16.mxu0 %v274_v0 }
  0x27   :  { %206 = vmatpush3.bf16.msra.mxu0 %v205_v16 }
  0x28   :  { %207 = vmatprep.subr.bf16.mxu0 %v274_v0 }
  0x2b   :  { %209 = vmatpush3.bf16.msra.mxu0 %v208_v19 }
  0x2c   :  { %210 = vmatprep.subr.bf16.mxu0 %v274_v0 }
  0x2f   :  { %212 = vmatpush3.bf16.msra.mxu0 %v211_v22 }
  0x30   :  { %213 = vmatprep.subr.bf16.mxu0 %v274_v0 }
  0x33   :  { %215 = vmatpush3.bf16.msra.mxu0 %v214_v25 }
  0x36   :  { %190 = vmatmul.mubr.f32.vlgmr.msra.gmra.mrb[0].mxu0 %v29_v26 }
 0x109   :  { %v119_v28 = vpop.f32.mrb[0].mxu0 }
 0x10a   :  { %v120_v29 = vadd.f32 %v139_v27, %v119_v28  ;;  %v191_v30 = vpop.f32.mrb[1].mxu0 }
 0x10c   :  { %123 = vst [vmem:[#allocation5] sm:$0xff] %v120_v29 }
 0x10d   :  { %256 = shalt.err (!%p253_p12)
}
 0x10e   :  { %s257_s6 = scalar_lea.hbm %s331_s3, 128 }
 0x10f   :  { %p258_p13 = scmp.ne.s32.totalorder %s331_s3, %s257_s6  ;;  %p261_p0 = scmp.lt.u32.totalorder %s257_s6, %s331_s3 }
 0x111   :  { %p263_p1 = pnand %p261_p0, %p258_p13 }
 0x113   :  { %266 = shalt.err (!%p263_p1)
}
 0x114   :  { %133 = dma.vmem_to_hbm [thread:$0]  %s131_s30, 128, %s331_s3, [#allocation4]  }
 0x115   :  { %269 = dma.done.wait [#allocation4], 128  }
 0x116   :  { %270 = vsyncadd [#allocation4], 4294967168 }
 0x117   :  { %137 = vsyncpa [#allocation3], 1 }
 0x118   :  { %138 = vsyncpa [#allocation4], 1 }

</bundles_post_ra>
